<compile_context>
chip_gen: v7x
topology: tpu7x:2x2x1
jax: 0.10.0
libtpu: 0.0.40
codegen_flags: <defaults>
</compile_context>

<pallas_src>
import jax
import jax.numpy as jnp
from jax.experimental import pallas as pl
from jax.experimental.pallas import tpu as pltpu


def _round_up(x, mult):
    return ((x + mult - 1) // mult) * mult


def _ffn_kernel(x_ref, w1_ref, w2_ref, o_ref, acc_ref):
    # x_ref  : (tm, dim_in)    native-dtype tile of flattened tokens
    # w1_ref : (dim_in, tff)   bf16 weight slice (full dim_ff when it fits VMEM)
    # w2_ref : (tff, dim_out)  bf16 weight slice
    # o_ref  : (tm, dim_out)   output tile
    # acc_ref: (tm, dim_out)   f32 accumulator across the dim_ff grid axis
    j = pl.program_id(1)

    @pl.when(j == 0)
    def _():
        acc_ref[...] = jnp.zeros_like(acc_ref)

    # Cast activations to the MXU compute dtype in-kernel (VPU work hidden under
    # the matmuls) instead of a separate wrapper-side XLA cast pass.
    x = x_ref[...].astype(w1_ref.dtype)
    h = jnp.dot(x, w1_ref[...], preferred_element_type=jnp.float32)
    h = jnp.maximum(h, 0.0)  # ReLU on the f32 intermediate (exact under ff tiling)
    acc_ref[...] += jnp.dot(h.astype(w2_ref.dtype), w2_ref[...],
                            preferred_element_type=jnp.float32)

    @pl.when(j == pl.num_programs(1) - 1)
    def _():
        o_ref[...] = acc_ref[...].astype(o_ref.dtype)


def position_wise_ffn(x, w1, w2, *, tm=1024, compute_dtype=jnp.bfloat16,
                      out_dtype=None):
    """x: (batch, seq, dim_in); w1: (dim_in, dim_ff); w2: (dim_ff, dim_out).

    Weights are stored pre-transposed as (in, out), i.e. equivalent to torch's
    `x @ weight.T`.  Pass w1/w2 already cast to `compute_dtype` (done once at
    parameter init) to avoid a recurring per-call HBM cast pass.  Returns
    (batch, seq, dim_out) in `out_dtype` (default x.dtype; pass bf16 if the
    consumer accepts it to halve output HBM traffic).
    """
    batch, seq, dim_in = x.shape
    dim_ff = w1.shape[1]
    dim_out = w2.shape[1]
    out_dtype = x.dtype if out_dtype is None else out_dtype

    # Fallback cast only — hoist this to parameter-init time in real use.
    if w1.dtype != compute_dtype:
        w1 = w1.astype(compute_dtype)
    if w2.dtype != compute_dtype:
        w2 = w2.astype(compute_dtype)

    m = batch * seq
    x2d = x.reshape(m, dim_in)  # contiguous collapse: metadata only, no HBM pass

    xbytes = jnp.dtype(x.dtype).itemsize
    cbytes = jnp.dtype(compute_dtype).itemsize
    obytes = jnp.dtype(out_dtype).itemsize

    # Token tile: large (amortizes ~0.35us/grid-step overhead) but sized so the
    # grid has >= 2 steps whenever M allows (v7x has 2 TCs on the parallel axis).
    tm_eff = min(tm, max(8, _round_up(pl.cdiv(m, 2), 8)))
    grid_m = pl.cdiv(m, tm_eff)

    # Generation-aware VMEM budget, with headroom for Mosaic-internal scratch:
    # ~112 MiB usable on v5e/v6e (128 MiB), ~48 MiB on v7x (64 MiB).
    try:
        vmem_cap = int(getattr(pltpu.get_tpu_info(), "vmem_capacity_bytes",
                               64 * 1024 * 1024))
    except Exception:
        vmem_cap = 64 * 1024 * 1024
    vmem_usable = max(vmem_cap - 16 * 1024 * 1024, 32 * 1024 * 1024)

    def _vmem_needed(tff, w_nbuf):
        return (2 * tm_eff * dim_in * xbytes       # x tiles (double-buffered)
                + 2 * tm_eff * dim_out * obytes    # out tiles (double-buffered)
                + tm_eff * dim_out * 4             # f32 accumulator scratch
                + tm_eff * tff * 4                 # f32 intermediate h
                + w_nbuf * tff * (dim_in + dim_out) * cbytes)  # weight slabs

    # Keep the full dim_ff slab resident (single-buffered) when it fits; else
    # tile dim_ff as a reduction grid axis so only double-buffered slices are
    # resident (the v7x large-dim_ff case).
    tff, w_nbuf = dim_ff, 1
    if _vmem_needed(dim_ff, 1) > vmem_usable:
        t = dim_ff
        while (t % 2 == 0 and (t // 2) % 128 == 0
               and _vmem_needed(t, 2) > vmem_usable):
            t //= 2
        if t < dim_ff and _vmem_needed(t, 2) <= vmem_usable:
            tff, w_nbuf = t, 2
        # else: no clean 128-multiple split; keep full residency (still correct,
        # the compiler will shrink pipeline buffers instead).
    grid_ff = dim_ff // tff

    vmem_limit = min(max(int(1.5 * _vmem_needed(tff, w_nbuf)), 32 * 1024 * 1024),
                     vmem_usable)

    if grid_ff == 1:
        # Constant index_map -> single-buffer the resident weights (saves VMEM,
        # the second pipeline buffer would never be used).
        w1_spec = pl.BlockSpec((dim_in, tff), lambda i, j: (0, j),
                               pipeline_mode=pl.Buffered(1))
        w2_spec = pl.BlockSpec((tff, dim_out), lambda i, j: (j, 0),
                               pipeline_mode=pl.Buffered(1))
    else:
        w1_spec = pl.BlockSpec((dim_in, tff), lambda i, j: (0, j))
        w2_spec = pl.BlockSpec((tff, dim_out), lambda i, j: (j, 0))

    cost = pl.CostEstimate(
        flops=2 * m * dim_ff * (dim_in + dim_out),
        transcendentals=0,
        bytes_accessed=(m * dim_in * xbytes
                        + dim_ff * (dim_in + dim_out) * cbytes
                        + m * dim_out * obytes),
    )

    out2d = pl.pallas_call(
        _ffn_kernel,
        out_shape=jax.ShapeDtypeStruct((m, dim_out), out_dtype),
        grid_spec=pltpu.PrefetchScalarGridSpec(
            num_scalar_prefetch=0,
            grid=(grid_m, grid_ff),
            in_specs=[
                pl.BlockSpec((tm_eff, dim_in), lambda i, j: (i, 0)),
                w1_spec,
                w2_spec,
            ],
            out_specs=pl.BlockSpec((tm_eff, dim_out), lambda i, j: (i, 0)),
            scratch_shapes=[pltpu.VMEM((tm_eff, dim_out), jnp.float32)],
        ),
        compiler_params=pltpu.CompilerParams(
            dimension_semantics=("parallel", "arbitrary"),
            vmem_limit_bytes=int(vmem_limit),
        ),
        cost_estimate=cost,
    )(x2d, w1, w2)

    return out2d.reshape(batch, seq, dim_out)


if __name__ == "__main__":
    # Module defaults: dim_in=128, dim_feedforward=512, dim_out=128, relu.
    batch, seq = 2, 8
    dim_in, dim_ff, dim_out = 128, 512, 128

    key = jax.random.PRNGKey(0)
    kx, k1, k2 = jax.random.split(key, 3)

    x = jax.random.normal(kx, (batch, seq, dim_in), dtype=jnp.float32)
    # PyTorch nn.Linear stores weight as (out, in); we keep (in, out) so the
    # kernel computes x @ W directly (== x @ weight.T in torch).  Weights are
    # cast to bf16 ONCE here (parameter init) — hoisted out of the per-forward
    # path per the perf review.
    w1 = (jax.random.normal(k1, (dim_in, dim_ff), dtype=jnp.float32) * 0.02
          ).astype(jnp.bfloat16)
    w2 = (jax.random.normal(k2, (dim_ff, dim_out), dtype=jnp.float32) * 0.02
          ).astype(jnp.bfloat16)

    out = position_wise_ffn(x, w1, w2)
    out = jax.block_until_ready(out)
    assert out.shape == (batch, seq, dim_out)
    assert out.dtype == x.dtype

    # Reference with the identical bf16-operand / f32-accumulate recipe.
    h = jnp.maximum(jnp.dot(x.astype(jnp.bfloat16), w1,
                            preferred_element_type=jnp.float32), 0.0)
    ref = jnp.dot(h.astype(jnp.bfloat16), w2,
                  preferred_element_type=jnp.float32).astype(x.dtype)

    assert jnp.allclose(out, ref, atol=1e-2, rtol=1e-2), (
        float(jnp.max(jnp.abs(out - ref))))

    print("KERNEL_OK")
</pallas_src>

<mosaic_0001>
module attributes {stable_mosaic.version = 11 : i64} {
  func.func @_ffn_kernel(%arg0: i32, %arg1: i32, %arg2: memref<8x128xf32, #tpu.memory_space<vmem>>, %arg3: memref<128x512xbf16, #tpu.memory_space<vmem>>, %arg4: memref<512x128xbf16, #tpu.memory_space<vmem>>, %arg5: memref<8x128xf32, #tpu.memory_space<vmem>>, %arg6: memref<8x128xf32, #tpu.memory_space<vmem>>) attributes {dimension_semantics = [#tpu.dimension_semantics<parallel>, #tpu.dimension_semantics<arbitrary>], iteration_bounds = array<i64: 2, 1>, scalar_prefetch = 0 : i64, scratch_operands = 1 : i64, tpu.core_type = #tpu.core_type<tc>, window_params = [{transform_indices = @transform_0, window_bounds = array<i64: 8, 128>}, {pipeline_mode = #tpu.pipeline_mode<synchronous>, transform_indices = @transform_1, window_bounds = array<i64: 128, 512>}, {pipeline_mode = #tpu.pipeline_mode<synchronous>, transform_indices = @transform_2, window_bounds = array<i64: 512, 128>}, {transform_indices = @transform_3, window_bounds = array<i64: 8, 128>}]} {
    %c0_i32 = arith.constant 0 : i32
    %0 = arith.cmpi eq, %arg1, %c0_i32 : i32
    %1 = arith.extui %0 : i1 to i32
    %c0_i32_0 = arith.constant 0 : i32
    %2 = arith.cmpi ne, %1, %c0_i32_0 : i32
    scf.if %2 {
      %cst_14 = arith.constant 0.000000e+00 : f32
      %18 = vector.broadcast %cst_14 : f32 to vector<8x128xf32>
      %c0_15 = arith.constant 0 : index
      %c0_16 = arith.constant 0 : index
      %19 = vector.load %arg6[%c0_15, %c0_16] : memref<8x128xf32, #tpu.memory_space<vmem>>, vector<8x128xf32>
      tpu.vector_store %arg6[%c0_15, %c0_16], %18 {strides = array<i32>} : memref<8x128xf32, #tpu.memory_space<vmem>>, vector<8x128xf32>,
    } else {
    }
    %c0 = arith.constant 0 : index
    %c0_1 = arith.constant 0 : index
    %3 = vector.load %arg2[%c0, %c0_1] : memref<8x128xf32, #tpu.memory_space<vmem>>, vector<8x128xf32>
    %4 = arith.truncf %3 : vector<8x128xf32> to vector<8x128xbf16>
    %c0_2 = arith.constant 0 : index
    %c0_3 = arith.constant 0 : index
    %5 = vector.load %arg3[%c0_2, %c0_3] : memref<128x512xbf16, #tpu.memory_space<vmem>>, vector<128x512xbf16>
    %cst = arith.constant dense<0.000000e+00> : vector<8x512xf32>
    %6 = tpu.matmul %4, %5, %cst {dimension_numbers = #tpu.dot_dimension_numbers<[1], [0], [0], [1], [0, 0, 1, 1], [], []>} : vector<8x128xbf16>, vector<128x512xbf16>, vector<8x512xf32> -> vector<8x512xf32>
    %cst_4 = arith.constant 0.000000e+00 : f32
    %7 = vector.broadcast %cst_4 : f32 to vector<8x512xf32>
    %8 = arith.maximumf %6, %7 : vector<8x512xf32>
    %c0_5 = arith.constant 0 : index
    %c0_6 = arith.constant 0 : index
    %9 = vector.load %arg6[%c0_5, %c0_6] : memref<8x128xf32, #tpu.memory_space<vmem>>, vector<8x128xf32>
    %10 = arith.truncf %8 : vector<8x512xf32> to vector<8x512xbf16>
    %c0_7 = arith.constant 0 : index
    %c0_8 = arith.constant 0 : index
    %11 = vector.load %arg4[%c0_7, %c0_8] : memref<512x128xbf16, #tpu.memory_space<vmem>>, vector<512x128xbf16>
    %cst_9 = arith.constant dense<0.000000e+00> : vector<8x128xf32>
    %12 = tpu.matmul %10, %11, %cst_9 {dimension_numbers = #tpu.dot_dimension_numbers<[1], [0], [0], [1], [0, 0, 1, 1], [], []>} : vector<8x512xbf16>, vector<512x128xbf16>, vector<8x128xf32> -> vector<8x128xf32>
    %13 = arith.addf %9, %12 : vector<8x128xf32>
    %c0_10 = arith.constant 0 : index
    %c0_11 = arith.constant 0 : index
    %14 = vector.load %arg6[%c0_10, %c0_11] : memref<8x128xf32, #tpu.memory_space<vmem>>, vector<8x128xf32>
    tpu.vector_store %arg6[%c0_10, %c0_11], %13 {strides = array<i32>} : memref<8x128xf32, #tpu.memory_space<vmem>>, vector<8x128xf32>,
    %c0_i32_12 = arith.constant 0 : i32
    %15 = arith.cmpi eq, %arg1, %c0_i32_12 : i32
    %16 = arith.extui %15 : i1 to i32
    %c0_i32_13 = arith.constant 0 : i32
    %17 = arith.cmpi ne, %16, %c0_i32_13 : i32
    scf.if %17 {
      %c0_14 = arith.constant 0 : index
      %c0_15 = arith.constant 0 : index
      %18 = vector.load %arg6[%c0_14, %c0_15] : memref<8x128xf32, #tpu.memory_space<vmem>>, vector<8x128xf32>
      %c0_16 = arith.constant 0 : index
      %c0_17 = arith.constant 0 : index
      %19 = vector.load %arg5[%c0_16, %c0_17] : memref<8x128xf32, #tpu.memory_space<vmem>>, vector<8x128xf32>
      tpu.vector_store %arg5[%c0_16, %c0_17], %18 {strides = array<i32>} : memref<8x128xf32, #tpu.memory_space<vmem>>, vector<8x128xf32>,
    } else {
    }
    return
  }
  func.func @transform_0(%arg0: i32, %arg1: i32) -> (i32, i32) {
    %c0_i32 = arith.constant 0 : i32
    %c0_i32_0 = arith.constant 0 : i32
    return %arg0, %c0_i32 : i32, i32
  }
  func.func @transform_1(%arg0: i32, %arg1: i32) -> (i32, i32) {
    %c0_i32 = arith.constant 0 : i32
    %c0_i32_0 = arith.constant 0 : i32
    return %c0_i32, %arg1 : i32, i32
  }
  func.func @transform_2(%arg0: i32, %arg1: i32) -> (i32, i32) {
    %c0_i32 = arith.constant 0 : i32
    %c0_i32_0 = arith.constant 0 : i32
    return %arg1, %c0_i32 : i32, i32
  }
  func.func @transform_3(%arg0: i32, %arg1: i32) -> (i32, i32) {
    %c0_i32 = arith.constant 0 : i32
    %c0_i32_0 = arith.constant 0 : i32
    return %arg0, %c0_i32 : i32, i32
  }
}

</mosaic_0001>

<bundles_post_ra>
// kernel: tpu_custom_call.1
= control target key start
LH: loop header
LB: loop body
LE: loop exit
PB: predicated region body
PF: predicated region fallthrough
CT: control target
= control target key end

     0   :  { %8 = vsyncpa [#allocation4], 0  ;;  %s1747_s0 = inlined_call_operand.hbm [shape: f32[16,128], index: 0, kind: input, shape index: {}]   ;;  %s1748_s1 = inlined_call_operand.hbm [shape: bf16[128,512], index: 1, kind: input, shape index: {}]   ;;  %s1749_s2 = inlined_call_operand.hbm [shape: bf16[512,128], index: 2, kind: input, shape index: {}]   ;;  %s1750_s3 = inlined_call_operand.hbm [shape: f32[16,128], index: 3, kind: output, shape index: {}]  }
   0x1   :  { %10 = vsyncpa [#allocation4 + $0x1], 0 }
   0x2   :  { %11 = vsyncpa [#allocation7], 0 }
   0x3   :  { %12 = vsyncpa [#allocation5], 0 }
   0x4   :  { %14 = vsyncpa [#allocation5 + $0x1], 0  ;;  %s1490_s12 = smov 0   ;;  %s1492_s13 = smov 0  }
   0x5   :  { %s1494_s14 = smov 0   ;;  %s1496_s15 = smov 0  }
   0x6   :  { %s1498_s16 = smov 0   ;;  %s1500_s17 = smov 0  }
   0x7 LB: > { %s994_s18 = sadd.s32 4294967295, %s1459_s17   ;;  %s995_s19 = sadd.s32 4294967294, %s1459_s17   ;;  %s1459_s17 = sphi %s1500_s17, %s20_s17   ;;  %s1455_s16 = sphi %s1498_s16, %s1772_s16   ;;  %s1451_s15 = sphi %s1496_s15, %s1771_s15   ;;  %s1447_s14 = sphi %s1494_s14, %s1770_s14   ;;  %s1443_s13 = sphi %s1492_s13, %s1769_s13   ;;  %s1439_s12 = sphi %s1490_s12, %s1768_s12  }
   0x8   : > { %p52_p0 = scmp.ne.s32.totalorder %s1443_s13, %s1439_s12  ;;  %p1524_p1 = scmp.eq.s32.totalorder %s994_s18, 0 }
   0x9   : > { %p1528_p2 = scmp.eq.s32.totalorder %s994_s18, 1  ;;  %p134_p3 = scmp.eq.s32.totalorder %s995_s19, 1 }
   0xa   : > { %s1755_s20 = scalar_select %p1524_p1, 1, 0 }
   0xb   : > { %p1534_p4 = por %p1524_p1, %p52_p0  ;;  %p996_p5 = scmp.ge.s32.totalorder %s1459_s17, 1 }
   0xc   : > { %p1539_p6 = por %p134_p3, %p52_p0  ;;  %p141_p7 = scmp.lt.s32.totalorder %s1459_s17, 3 }
   0xd   : > { %s1757_s22 = scalar_select %p1534_p4, 1, 0 }
   0xe   : > { %s1758_s23 = scalar_select %p1539_p6, 1, 0 }
   0xf   : > { %p1544_p8 = pnand %p996_p5, %p141_p7  ;;  %s1461_s25 = smov [#allocation6]  }
  0x10   : > { %s156_s26 = sshll.u32 %s1461_s25, 4  ;;  %s1462_s28 = smov [#allocation8]   ;;  %s1548_s26 = int_to_ptr.vmem [resolvable:$true] %s156_s26 }
  0x11   : > { %p1131_p9 = pneg %p1544_p8  ;;  %s172_s29 = sshll.u32 %s1462_s28, 4  ;;  %s1559_s29 = int_to_ptr.vmem [resolvable:$true] %s172_s29 }
  0x12   : > { %s1287_s5 = scalar_lea.hbm %s1748_s1, 4096 }
  0x13   : > { %p1555_p11 = pnand %p1131_p9, %p1524_p1  ;;  %p1288_p12 = scmp.ne.s32.totalorder %s1748_s1, %s1287_s5 }
  0x14   : > { %p1294_p5 = scmp.lt.u32.totalorder %s1287_s5, %s1748_s1 }
  0x15   : > { %p1289_p13 = pneg %p1555_p11 }
  0x17   : > { %p1290_p0 = pnand %p1289_p13, %p1288_p12 }
  0x19   : > { %p1291_p3 = pneg %p1290_p0 }
  0x1b   : > { %p1296_p7 = pnand %p1294_p5, %p1291_p3 }
  0x1d   : > { %1299 = shalt.err (!%p1296_p7)
}
  0x1e   : > { %s1300_s10 = scalar_lea.vmem %s1548_s26, 4096  ;;  %p1308_p1 = scmp.lt.s32.totalorder %s1548_s26, %s1548_s26 }
  0x1f   : > { %p1301_p9 = scmp.ne.s32.totalorder %s1548_s26, %s1300_s10  ;;  %p1309_p12 = scmp.lt.s32.totalorder %s1300_s10, %s1300_s10 }
  0x21   : > { %p1303_p10 = pnand %p1301_p9, %p1289_p13  ;;  %p1310_p0 = por %p1309_p12, %p1308_p1 }
  0x23   : > { %p1304_p6 = pneg %p1303_p10 }
  0x25   : > { %p1311_p4 = pnand %p1310_p0, %p1304_p6 }
  0x27   : > { %1314 = shalt.err (!%p1311_p4)
}
  0x28   : > { %s1463_s11 = smov 256   ;;  %s1464_s18 = smov 16  }
  0x29   : > { %1134 = dma.hbm_to_vmem [thread:$0]  (!%p1555_p11), %s1748_s1, 4096, %s1548_s26, [#allocation7], %s1463_s11, %s1463_s11, %s1464_s18  }
  0x2a   : > { %s1315_s4 = scalar_lea.hbm %s1749_s2, 4096 }
  0x2b   : > { %p1316_p1 = scmp.ne.s32.totalorder %s1749_s2, %s1315_s4  ;;  %p1322_p10 = scmp.lt.u32.totalorder %s1315_s4, %s1749_s2 }
  0x2d   : > { %p1318_p4 = pnand %p1316_p1, %p1289_p13 }
  0x2f   : > { %p1319_p6 = pneg %p1318_p4 }
  0x31   : > { %p1324_p3 = pnand %p1322_p10, %p1319_p6 }
  0x33   : > { %1327 = shalt.err (!%p1324_p3)
}
  0x34   : > { %s1328_s26 = scalar_lea.vmem %s1559_s29, 4096  ;;  %p1336_p12 = scmp.lt.s32.totalorder %s1559_s29, %s1559_s29 }
  0x35   : > { %p1329_p5 = scmp.ne.s32.totalorder %s1559_s29, %s1328_s26  ;;  %p1337_p0 = scmp.lt.s32.totalorder %s1328_s26, %s1328_s26 }
  0x37   : > { %p1331_p7 = pnand %p1329_p5, %p1289_p13  ;;  %p1338_p1 = por %p1337_p0, %p1336_p12 }
  0x39   : > { %p1332_p9 = pneg %p1331_p7 }
  0x3b   : > { %p1339_p4 = pnand %p1338_p1, %p1332_p9 }
  0x3d   : > { %1342 = shalt.err (!%p1339_p4)
}
  0x3e   : > { %s1465_s9 = smov 64   ;;  %s1466_s10 = smov 4  }
  0x3f   : > { %1137 = dma.hbm_to_vmem [thread:$0]  (!%p1555_p11), %s1749_s2, 4096, %s1559_s29, [#allocation7], %s1465_s9, %s1465_s9, %s1466_s10  }
  0x40   : > { %s32_s19 = sadd.s32 1, %s1455_s16  ;;  %s39_s25 = sadd.s32 1, %s1447_s14 }
  0x41   : > { %p34_p13 = scmp.ge.s32.totalorder %s32_s19, 2  ;;  %p46_p6 = scmp.ne.s32.totalorder %s1447_s14, %s1443_s13 }
  0x42   : > { %p47_p10 = scmp.eq.s32.totalorder %s1459_s17, 0  ;;  %p1148_p3 = scmp.lt.s32.totalorder %s1459_s17, 2 }
  0x43   : > { %s1774_s19 = smov (%p34_p13, %s32_s19), 0  ;;  %p1623_p7 = por %p1528_p2, %p46_p6 }
  0x44   : > { %p48_p5 = por %p47_p10, %p46_p6  ;;  %s36_s27 = ssub.s32 %s1455_s16, %s1774_s19 }
  0x45   : > { %s1761_s28 = scalar_select %p1623_p7, 1, 0 }
  0x46   : > { %s186_s30 = sand.u32 1, %s1447_s14   ;;  %p37_p9 = scmp.eq.s32.totalorder %s36_s27, 0 }
  0x47   : > { %s1000_s29 = sshll.u32 %s186_s30, 3  ;;  %s1001_s4 = sshll.u32 %s1455_s16, 7 }
  0x48   : > { %s1632_s5 = scalar_select %p37_p9, %s1447_s14, %s39_s25  }
  0x49   : > { %s1637_s8 = scalar_lea.hbm %s1747_s0, %s1001_s4  ;;  %s190_s21 = scalar_lea.vmem [#allocation3], %s1000_s29 }
  0x4a   : > { %s197_s26 = sshll.u32 %s190_s21, 4  ;;  %p1641_p2 = pnand %p1148_p3, %p48_p5  ;;  %s1645_s26 = int_to_ptr.vmem [resolvable:$true] %s197_s26 }
  0x4b   : > { %s187_s10 = scalar_lea.sflag [#allocation4], %s186_s30  ;;  %s1343_s11 = scalar_lea.hbm %s1637_s8, 128 }
  0x4c   : > { %p1344_p11 = scmp.ne.s32.totalorder %s1637_s8, %s1343_s11  ;;  %p1345_p12 = pneg %p1641_p2 }
  0x4d   : > { %s1348_s27 = scalar_lea.hbm %s1747_s0, 256  ;;  %p1349_p4 = scmp.lt.u32.totalorder %s1637_s8, %s1747_s0 }
  0x4e   : > { %p1346_p0 = pnand %p1345_p12, %p1344_p11  ;;  %p1350_p13 = scmp.lt.u32.totalorder %s1348_s27, %s1343_s11 }
  0x4f   : > { %p1352_p10 = scmp.lt.u32.totalorder %s1343_s11, %s1637_s8 }
  0x50   : > { %p1347_p1 = pneg %p1346_p0  ;;  %p1351_p6 = por %p1350_p13, %p1349_p4 }
  0x52   : > { %p1353_p3 = por %p1352_p10, %p1351_p6 }
  0x54   : > { %p1354_p5 = pnand %p1353_p3, %p1347_p1 }
  0x56   : > { %1357 = shalt.err (!%p1354_p5)
}
  0x57   : > { %s1358_s30 = scalar_lea.vmem %s1645_s26, 128  ;;  %s1467_s6 = smov [#allocation3]  }
  0x58   : > { %p1359_p9 = scmp.ne.s32.totalorder %s1645_s26, %s1358_s30  ;;  %s1363_s7 = sshll.u32 %s1467_s6, 4  ;;  %s1364_s7 = int_to_ptr.vmem [resolvable:$false] %s1363_s7 }
  0x59   : > { %s1365_s21 = scalar_lea.vmem %s1364_s7, 256  ;;  %p1366_p7 = scmp.lt.s32.totalorder %s1645_s26, %s1364_s7 }
  0x5a   : > { %p1361_p11 = pnand %p1359_p9, %p1345_p12  ;;  %p1367_p4 = scmp.lt.s32.totalorder %s1365_s21, %s1358_s30 }
  0x5c   : > { %p1362_p0 = pneg %p1361_p11  ;;  %p1368_p13 = por %p1367_p4, %p1366_p7 }
  0x5e   : > { %p1369_p6 = pnand %p1368_p13, %p1362_p0 }
  0x60   : > { %1372 = shalt.err (!%p1369_p6)
}
  0x61   : > { %1141 = dma.hbm_to_vmem [thread:$0]  (!%p1641_p2), %s1637_s8, 128, %s1645_s26, %s187_s10  }
  0x62   : > { %206 = sbr.rel (%p1544_p8) target bundleno = 592 (0x250), region = 32  ;;  %s1675_s11 = sand.u32 (!%p1544_p8), 1, %s1443_s13  }
  0x63   : > { %s1003_s18 = sshll.u32 (!%p1544_p8), %s1675_s11, 3  ;;  %s209_s25 = scalar_lea.sflag (!%p1544_p8), [#allocation4], %s1675_s11 }
  0x64   : > { %s1681_s27 = scalar_lea.vmem (!%p1544_p8), [#allocation3], %s1003_s18  ;;  %p1763_p7 = scmp.ne.s32.totalorder (!%p1544_p8), %s1757_s22, 0 }
  0x69   : > { %1426 = dma.done.wait (%p1763_p7), %s209_s25, 128  }
  0x6a   : > { %1428 = vsyncadd (%p1763_p7), %s209_s25, 4294967168  ;;  %p1764_p2 = scmp.ne.s32.totalorder %s1755_s20, 0 }
  0x6c   : > { %1430 = dma.done.wait (%p1764_p2), [#allocation7], 8192  }
  0x6d   : > { %1432 = vsyncadd (%p1764_p2), [#allocation7], 4294959104  ;;  %v1468_v0 = vmov 0   ;;  %v1207_v1 = vld [vmem:[#allocation6 + $0x4] ss:$16 sps:$4 sm:$0xff]   ;;  %v1259_v39 = vld [vmem:[#allocation8 + $0x48] sm:$0xff]  }
  0x6e   : > { %477 = vmatprep.mubr.bf16.mxu0 %v1468_v0  ;;  %518 = vmatprep.mubr.bf16.mxu1 %v1468_v0  ;;  %v1209_v2 = vld [vmem:[#allocation6 + $0xc] ss:$16 sps:$4 sm:$0xff]   ;;  %v1211_v3 = vld [vmem:[#allocation6] ss:$16 sps:$4 sm:$0xff]   ;;  %v1212_v4 = vld [vmem:[#allocation6 + $0x8] ss:$16 sps:$4 sm:$0xff]  }
  0x6f   : > { %445 = vmatprep.subr.bf16.mxu0 %v1207_v1  ;;  %486 = vmatprep.subr.bf16.mxu1 %v1209_v2  ;;  %v1213_v5 = vld [vmem:[#allocation6 + $0x24] ss:$16 sps:$4 sm:$0xff]   ;;  %v1215_v6 = vld [vmem:[#allocation6 + $0x2c] ss:$16 sps:$4 sm:$0xff]   ;;  %v1217_v7 = vld [vmem:[#allocation6 + $0x20] ss:$16 sps:$4 sm:$0xff]  }
  0x70   : > { %446 = vmatpush1.bf16.msra.mxu0 %v1211_v3  ;;  %487 = vmatpush1.bf16.msra.mxu1 %v1212_v4  ;;  %v1218_v8 = vld [vmem:[#allocation6 + $0x28] ss:$16 sps:$4 sm:$0xff]   ;;  %v1219_v9 = vld [vmem:[#allocation6 + $0x44] ss:$16 sps:$4 sm:$0xff]   ;;  %v1221_v10 = vld [vmem:[#allocation6 + $0x4c] ss:$16 sps:$4 sm:$0xff]  }
  0x71   : > { %447 = vmatprep.subr.bf16.mxu0 %v1213_v5  ;;  %488 = vmatprep.subr.bf16.mxu1 %v1215_v6  ;;  %v1223_v11 = vld [vmem:[#allocation6 + $0x40] ss:$16 sps:$4 sm:$0xff]   ;;  %v1224_v12 = vld [vmem:[#allocation6 + $0x48] ss:$16 sps:$4 sm:$0xff]   ;;  %v1225_v13 = vld [vmem:[#allocation6 + $0x64] ss:$16 sps:$4 sm:$0xff]  }
  0x72   : > { %v1227_v14 = vld [vmem:[#allocation6 + $0x6c] ss:$16 sps:$4 sm:$0xff]   ;;  %v1229_v15 = vld [vmem:[#allocation6 + $0x60] ss:$16 sps:$4 sm:$0xff]   ;;  %v1230_v16 = vld [vmem:[#allocation6 + $0x68] ss:$16 sps:$4 sm:$0xff]  }
  0x73   : > { %v1231_v17 = vld [vmem:[#allocation6 + $0x84] ss:$16 sps:$4 sm:$0xff]   ;;  %v1233_v18 = vld [vmem:[#allocation6 + $0x8c] ss:$16 sps:$4 sm:$0xff]   ;;  %v1235_v19 = vld [vmem:[#allocation6 + $0x80] ss:$16 sps:$4 sm:$0xff]  }
  0x74   : > { %448 = vmatpush1.bf16.msra.mxu0 %v1217_v7  ;;  %489 = vmatpush1.bf16.msra.mxu1 %v1218_v8  ;;  %v1236_v20 = vld [vmem:[#allocation6 + $0x88] ss:$16 sps:$4 sm:$0xff]   ;;  %v1237_v21 = vld [vmem:[#allocation6 + $0xa4] ss:$16 sps:$4 sm:$0xff]   ;;  %v1239_v22 = vld [vmem:[#allocation6 + $0xac] ss:$16 sps:$4 sm:$0xff]  }
  0x75   : > { %449 = vmatprep.subr.bf16.mxu0 %v1219_v9  ;;  %490 = vmatprep.subr.bf16.mxu1 %v1221_v10  ;;  %v1241_v23 = vld [vmem:[#allocation6 + $0xa0] ss:$16 sps:$4 sm:$0xff]   ;;  %v1242_v24 = vld [vmem:[#allocation6 + $0xa8] ss:$16 sps:$4 sm:$0xff]   ;;  %v1243_v25 = vld [vmem:[#allocation6 + $0xc4] ss:$16 sps:$4 sm:$0xff]  }
  0x76   : > { %v1245_v26 = vld [vmem:[#allocation6 + $0xcc] ss:$16 sps:$4 sm:$0xff]   ;;  %v1247_v27 = vld [vmem:[#allocation6 + $0xc0] ss:$16 sps:$4 sm:$0xff]   ;;  %v1248_v28 = vld [vmem:[#allocation6 + $0xc8] ss:$16 sps:$4 sm:$0xff]  }
  0x77   : > { %v1249_v29 = vld [vmem:[#allocation6 + $0xe4] ss:$16 sps:$4 sm:$0xff]   ;;  %v1251_v30 = vld [vmem:[#allocation6 + $0xec] ss:$16 sps:$4 sm:$0xff]   ;;  %v1253_v31 = vld [vmem:[#allocation6 + $0xe0] ss:$16 sps:$4 sm:$0xff]  }
  0x78   : > { %450 = vmatpush1.bf16.msra.mxu0 %v1223_v11  ;;  %491 = vmatpush1.bf16.msra.mxu1 %v1224_v12  ;;  %v1254_v32 = vld [vmem:[#allocation6 + $0xe8] ss:$16 sps:$4 sm:$0xff]   ;;  %v1255_v34 = vld [vmem:[#allocation8 + $0x40] sm:$0xff]   ;;  %v1263_v43 = vld [vmem:[#allocation8 + $0x50] sm:$0xff]   ;;  %s1072_s20 = sshll.u32 %s1451_s15, 7  ;;  %s242_s22 = scalar_lea.vmem [#allocation9], %s1003_s18 }
  0x79   : > { %451 = vmatprep.subr.bf16.mxu0 %v1225_v13  ;;  %492 = vmatprep.subr.bf16.mxu1 %v1227_v14  ;;  %v251_v33 = vld [vmem:[%s1681_s27] sm:$0xff]  ;;  %v1256_v35 = vld [vmem:[#allocation8 + $0xc0] sm:$0xff]   ;;  %v1260_v40 = vld [vmem:[#allocation8 + $0xc8] sm:$0xff]   ;;  %s893_s24 = sshll.u32 %s242_s22, 4  ;;  %s1698_s9 = scalar_lea.hbm %s1750_s3, %s1072_s20  ;;  %s1700_s24 = int_to_ptr.vmem [resolvable:$true] %s893_s24 }
  0x7a   : > { %v1257_v36 = vld [vmem:[#allocation8] sm:$0xff]   ;;  %v252_v37 = vpack.c.bf16 %v251_v33, %v251_v33  ;;  %v1261_v41 = vld [vmem:[#allocation8 + $0x8] sm:$0xff]   ;;  %v1264_v44 = vld [vmem:[#allocation8 + $0xd0] sm:$0xff]   ;;  %s880_s15 = scalar_lea.sflag [#allocation5], %s1675_s11  ;;  %s1373_s10 = scalar_lea.vmem %s1700_s24, 128 }
  0x7b   : > { %v1258_v38 = vld [vmem:[#allocation8 + $0x80] sm:$0xff]   ;;  %v1262_v42 = vld [vmem:[#allocation8 + $0x88] sm:$0xff]   ;;  %v1265_v45 = vld [vmem:[#allocation8 + $0x10] sm:$0xff]   ;;  %p1374_p8 = scmp.ne.s32.totalorder %s1700_s24, %s1373_s10  ;;  %p1765_p12 = scmp.ne.s32.totalorder %s1761_s28, 0 }
  0x7c   : > { %452 = vmatpush1.bf16.msra.mxu0 %v1229_v15  ;;  %493 = vmatpush1.bf16.msra.mxu1 %v1230_v16  ;;  %v1266_v46 = vld [vmem:[#allocation8 + $0x90] sm:$0xff]   ;;  %v1267_v47 = vld [vmem:[#allocation8 + $0x58] sm:$0xff]   ;;  %v1271_v51 = vld [vmem:[#allocation8 + $0x60] sm:$0xff]   ;;  %s1469_s29 = smov [#allocation9]  }
  0x7d   : > { %453 = vmatprep.subr.bf16.mxu0 %v1231_v17  ;;  %494 = vmatprep.subr.bf16.mxu1 %v1233_v18  ;;  %v1268_v48 = vld [vmem:[#allocation8 + $0xd8] sm:$0xff]   ;;  %v1272_v52 = vld [vmem:[#allocation8 + $0xe0] sm:$0xff]   ;;  %v1275_v55 = vld [vmem:[#allocation8 + $0x68] sm:$0xff]   ;;  %p1375_p1 = pnand %p1374_p8, %p1765_p12  ;;  %s1377_s4 = sshll.u32 %s1469_s29, 4  ;;  %s1378_s4 = int_to_ptr.vmem [resolvable:$false] %s1377_s4 }
  0x7e   : > { %v1269_v49 = vld [vmem:[#allocation8 + $0x18] sm:$0xff]   ;;  %v1273_v53 = vld [vmem:[#allocation8 + $0x20] sm:$0xff]   ;;  %v1276_v56 = vld [vmem:[#allocation8 + $0xe8] sm:$0xff]   ;;  %s1379_s30 = scalar_lea.vmem %s1378_s4, 256  ;;  %p1380_p3 = scmp.lt.s32.totalorder %s1700_s24, %s1378_s4 }
  0x7f   : > { %v1270_v50 = vld [vmem:[#allocation8 + $0x98] sm:$0xff]   ;;  %v1274_v54 = vld [vmem:[#allocation8 + $0xa0] sm:$0xff]   ;;  %v1277_v57 = vld [vmem:[#allocation8 + $0x28] sm:$0xff]   ;;  %p1376_p10 = pneg %p1375_p1  ;;  %p1381_p5 = scmp.lt.s32.totalorder %s1379_s30, %s1373_s10 }
  0x80   : > { %454 = vmatpush1.bf16.msra.mxu0 %v1235_v19  ;;  %495 = vmatpush1.bf16.msra.mxu1 %v1236_v20  ;;  %v1278_v58 = vld [vmem:[#allocation8 + $0xa8] sm:$0xff]   ;;  %v1279_v59 = vld [vmem:[#allocation8 + $0x70] sm:$0xff]   ;;  %v1283_v63 = vld [vmem:[#allocation8 + $0x78] sm:$0xff]  }
  0x81   : > { %455 = vmatprep.subr.bf16.mxu0 %v1237_v21  ;;  %496 = vmatprep.subr.bf16.mxu1 %v1239_v22  ;;  %v1280_v60 = vld [vmem:[#allocation8 + $0xf0] sm:$0xff]   ;;  %v1284_v0 = vld [vmem:[#allocation8 + $0xf8] sm:$0xff]   ;;  %p1382_p9 = por %p1381_p5, %p1380_p3 }
  0x82   : > { %v1281_v61 = vld [vmem:[#allocation8 + $0x30] sm:$0xff]   ;;  %v1285_v1 = vld [vmem:[#allocation8 + $0x38] sm:$0xff]  }
  0x83   : > { %v1282_v62 = vld [vmem:[#allocation8 + $0xb0] sm:$0xff]   ;;  %v1286_v2 = vld [vmem:[#allocation8 + $0xb8] sm:$0xff]   ;;  %p1383_p11 = pnand %p1382_p9, %p1376_p10 }
  0x84   : > { %456 = vmatpush1.bf16.msra.mxu0 %v1241_v23  ;;  %497 = vmatpush1.bf16.msra.mxu1 %v1242_v24 }
  0x85   : > { %457 = vmatprep.subr.bf16.mxu0 %v1243_v25  ;;  %498 = vmatprep.subr.bf16.mxu1 %v1245_v26 }
  0x88   : > { %458 = vmatpush1.bf16.msra.mxu0 %v1247_v27  ;;  %499 = vmatpush1.bf16.msra.mxu1 %v1248_v28 }
  0x89   : > { %459 = vmatprep.subr.bf16.mxu0 %v1249_v29  ;;  %500 = vmatprep.subr.bf16.mxu1 %v1251_v30 }
  0x8c   : > { %460 = vmatpush1.bf16.msra.mxu0 %v1253_v31  ;;  %501 = vmatpush1.bf16.msra.mxu1 %v1254_v32 }
  0x8d   : > { %1075 = vmatprep.subr.bf16.mxu0 %v1255_v34  ;;  %1097 = vmatprep.subr.bf16.mxu1 %v1256_v35 }
  0x8f   : > { %478 = vmatmul.mubr.bf16.vlgmr.msra.gmra.mrb[0].mxu0 %v252_v37  ;;  %519 = vmatmul.mubr.bf16.vlgmr.msra.gmra.mrb[0].mxu1 %v252_v37 }
  0x90   : > { %1076 = vmatpush3.bf16.msra.mxu0 %v1257_v36  ;;  %1098 = vmatpush3.bf16.msra.mxu1 %v1258_v38 }
  0x91   : > { %1077 = vmatprep.subr.bf16.mxu0 %v1259_v39  ;;  %1099 = vmatprep.subr.bf16.mxu1 %v1260_v40 }
  0x94   : > { %1078 = vmatpush3.bf16.msra.mxu0 %v1261_v41  ;;  %1100 = vmatpush3.bf16.msra.mxu1 %v1262_v42 }
  0x95   : > { %1079 = vmatprep.subr.bf16.mxu0 %v1263_v43  ;;  %1101 = vmatprep.subr.bf16.mxu1 %v1264_v44 }
  0x98   : > { %1080 = vmatpush3.bf16.msra.mxu0 %v1265_v45  ;;  %1102 = vmatpush3.bf16.msra.mxu1 %v1266_v46 }
  0x99   : > { %1081 = vmatprep.subr.bf16.mxu0 %v1267_v47  ;;  %1103 = vmatprep.subr.bf16.mxu1 %v1268_v48 }
  0x9c   : > { %1082 = vmatpush3.bf16.msra.mxu0 %v1269_v49  ;;  %1104 = vmatpush3.bf16.msra.mxu1 %v1270_v50 }
  0x9d   : > { %1083 = vmatprep.subr.bf16.mxu0 %v1271_v51  ;;  %1105 = vmatprep.subr.bf16.mxu1 %v1272_v52 }
  0xa0   : > { %1084 = vmatpush3.bf16.msra.mxu0 %v1273_v53  ;;  %1106 = vmatpush3.bf16.msra.mxu1 %v1274_v54 }
  0xa1   : > { %1085 = vmatprep.subr.bf16.mxu0 %v1275_v55  ;;  %1107 = vmatprep.subr.bf16.mxu1 %v1276_v56 }
  0xa4   : > { %1086 = vmatpush3.bf16.msra.mxu0 %v1277_v57  ;;  %1108 = vmatpush3.bf16.msra.mxu1 %v1278_v58 }
  0xa5   : > { %1087 = vmatprep.subr.bf16.mxu0 %v1279_v59  ;;  %1109 = vmatprep.subr.bf16.mxu1 %v1280_v60 }
  0xa8   : > { %1088 = vmatpush3.bf16.msra.mxu0 %v1281_v61  ;;  %1110 = vmatpush3.bf16.msra.mxu1 %v1282_v62 }
  0xa9   : > { %1089 = vmatprep.subr.bf16.mxu0 %v1283_v63  ;;  %1111 = vmatprep.subr.bf16.mxu1 %v1284_v0 }
  0xac   : > { %1090 = vmatpush3.bf16.msra.mxu0 %v1285_v1  ;;  %1112 = vmatpush3.bf16.msra.mxu1 %v1286_v2 }
 0x162   : > { %v479_v3 = vpop.f32.mrb[0].mxu0  ;;  %v520_v4 = vpop.f32.mrb[0].mxu1 }
 0x163   : > { %v527_v5 = vmax.f32 %v479_v3, 0.0  ;;  %v529_v6 = vmax.f32 %v520_v4, 0.0  ;;  %v481_v7 = vpop.f32.mrb[1].mxu0  ;;  %v522_v8 = vpop.f32.mrb[1].mxu1 }
 0x164   : > { %v528_v9 = vmax.f32 %v481_v7, 0.0  ;;  %v530_v10 = vmax.f32 %v522_v8, 0.0  ;;  %v483_v11 = vpop.f32.mrb[2].mxu0  ;;  %v524_v12 = vpop.f32.mrb[2].mxu1 }
 0x165   : > { %v484_v13 = vpop.f32.mrb[3].mxu0  ;;  %v525_v14 = vpop.f32.mrb[3].mxu1  ;;  %v532_v17 = vpack.c.bf16 %v527_v5, %v527_v5  ;;  %v534_v18 = vpack.c.bf16 %v529_v6, %v529_v6 }
 0x166   : > { %v533_v15 = vpack.c.bf16 %v528_v9, %v528_v9  ;;  %v535_v16 = vpack.c.bf16 %v530_v10, %v530_v10 }
 0x168   : > { %824 = vmatprep.mubr.bf16.mxu0 %v533_v15  ;;  %864 = vmatprep.mubr.bf16.mxu1 %v535_v16 }
 0x169   : > { %825 = vmatmul.mubr.bf16.vlgmr.msra.gmra.mrb[4].mxu0 %v532_v17  ;;  %865 = vmatmul.mubr.bf16.vlgmr.msra.gmra.mrb[4].mxu1 %v534_v18 }
 0x23c   : > { %v1091_v19 = vpop.f32.mrb[4].mxu0  ;;  %v1113_v20 = vpop.f32.mrb[4].mxu1 }
 0x23d   : > { %v1092_v21 = vpop.f32.mrb[5].mxu0  ;;  %v1114_v22 = vpop.f32.mrb[5].mxu1 }
 0x23e   : > { %v1093_v23 = vadd.f32 %v1092_v21, %v1091_v19  ;;  %v1115_v24 = vadd.f32 %v1114_v22, %v1113_v20  ;;  %v1094_v25 = vpop.f32.mrb[6].mxu0  ;;  %v1116_v26 = vpop.f32.mrb[6].mxu1 }
 0x23f   : > { %v1095_v27 = vpop.f32.mrb[7].mxu0  ;;  %v1117_v28 = vpop.f32.mrb[7].mxu1 }
 0x240   : > { %v867_v29 = vadd.f32 %v1115_v24, %v1093_v23 }
 0x242   : > { %878 = vst [vmem:[%s242_s22] sm:$0xff] %v867_v29 }
 0x243   : > { %1386 = shalt.err (!%p1383_p11)
}
 0x244   : > { %s1387_s6 = scalar_lea.hbm %s1698_s9, 128  ;;  %s1391_s11 = scalar_lea.hbm %s1750_s3, 256 }
 0x245   : > { %p1388_p0 = scmp.ne.s32.totalorder %s1698_s9, %s1387_s6  ;;  %p1392_p6 = scmp.lt.u32.totalorder %s1698_s9, %s1750_s3 }
 0x246   : > { %p1393_p7 = scmp.lt.u32.totalorder %s1391_s11, %s1387_s6  ;;  %p1395_p8 = scmp.lt.u32.totalorder %s1387_s6, %s1698_s9 }
 0x247   : > { %p1389_p4 = pnand %p1388_p0, %p1765_p12 }
 0x248   : > { %p1394_p2 = por %p1393_p7, %p1392_p6 }
 0x249   : > { %p1390_p13 = pneg %p1389_p4 }
 0x24a   : > { %p1396_p1 = por %p1395_p8, %p1394_p2 }
 0x24c   : > { %p1397_p10 = pnand %p1396_p1, %p1390_p13 }
 0x24e   : > { %1400 = shalt.err (!%p1397_p10)
}
 0x24f   : > { %1129 = dma.vmem_to_hbm [thread:$0]  (%p1765_p12), %s1700_s24, 128, %s1698_s9, %s880_s15  }
 0x250 PF: > { %s905_s27 = sand.u32 1, %s1439_s12   ;;  %p1766_p3 = scmp.ne.s32.totalorder %s1758_s23, 0 }
 0x251   : > { %p1767_p5 = scmp.ge.s32.totalorder %s1459_s17, 2  ;;  %s906_s20 = scalar_lea.sflag [#allocation5], %s905_s27 }
 0x253   : > { %p1143_p9 = pnand %p1767_p5, %p1766_p3 }
 0x255   : > { %1434 = dma.done.wait (!%p1143_p9), %s906_s20, 128  }
 0x256   : > { %1436 = vsyncadd (!%p1143_p9), %s906_s20, 4294967168  ;;  %s20_s17 = sadd.s32 1, %s1459_s17   ;;  %s1768_s12 = smov %s1443_s13 }
 0x257   : > { %p17_p11 = scmp.ge.s32.totalorder %s20_s17, 4   ;;  %s1769_s13 = smov %s1447_s14 }
 0x258   : > { %s1770_s14 = smov %s1632_s5  ;;  %s1771_s15 = smov %s1455_s16 }
 0x259   : > { %s1772_s16 = smov %s1774_s19  ;;  %19 = sbr.rel (!%p17_p11) target bundleno = 7 (0x7), region = 95 }
 0x260   :  { %911 = vsyncpa [#allocation4], 1 }
 0x261   :  { %913 = vsyncpa [#allocation4 + $0x1], 1 }
 0x262   :  { %914 = vsyncpa [#allocation7], 1 }
 0x263   :  { %915 = vsyncpa [#allocation5], 1 }
 0x264   :  { %917 = vsyncpa [#allocation5 + $0x1], 1 }

</bundles_post_ra>
